<compile_context>
chip_gen: v7x
topology: tpu7x:2x2x1
jax: 0.10.0
libtpu: 0.0.40
codegen_flags: <defaults>
</compile_context>

<pallas_src>
import functools

import jax
import jax.numpy as jnp
import numpy as np
from jax.experimental import pallas as pl
from jax.experimental.pallas import tpu as pltpu


# -----------------------------------------------------------------------------
# Stateless hash PRNG (works on TPU and under interpret mode).
# -----------------------------------------------------------------------------
def _keep_mask(idx_u32, seed_u32, kprob):
    """Bernoulli(kprob) keep mask from a per-element uint32 counter + seed."""
    x = idx_u32 * jnp.uint32(0x9E3779B1) + seed_u32 * jnp.uint32(0x85EBCA77)
    x = x ^ (x >> 16)
    x = x * jnp.uint32(0x7FEB352D)
    x = x ^ (x >> 15)
    x = x * jnp.uint32(0x846CA68B)
    x = x ^ (x >> 16)
    u24 = x >> 8                                        # uniform in [0, 2^24)
    threshold = jnp.uint32(int(round((1.0 - float(kprob)) * float(1 << 24))))
    return u24 >= threshold                             # keep with prob kprob


# -----------------------------------------------------------------------------
# Kernel 1: SparseDropout on the nonzero values of a sparse COO tensor.
# -----------------------------------------------------------------------------
def _sparse_dropout_kernel(seed_ref, vals_ref, out_ref, *, kprob):
    shape = vals_ref.shape                              # (block_rows, 128)
    row = jax.lax.broadcasted_iota(jnp.int32, shape, 0) + pl.program_id(0) * shape[0]
    lane = jax.lax.broadcasted_iota(jnp.int32, shape, 1)
    gidx = (row * shape[1] + lane).astype(jnp.uint32)   # global flat element id
    keep = _keep_mask(gidx, seed_ref[0].astype(jnp.uint32), kprob)
    out_ref[...] = jnp.where(
        keep, vals_ref[...] * jnp.float32(1.0 / kprob), jnp.float32(0.0)
    )


def sparse_dropout_values(values, seed, *, kprob):
    """Dropout over the value vector of a sparse tensor.

    Returns new_values (length nnz): kept entries are values / kprob, dropped
    entries are exactly 0.  (No separate mask output: it is recoverable as
    new_values != 0 because sparse COO values are nonzero.)
    """
    nnz = values.shape[0]
    lanes = 128
    rows = -(-nnz // lanes)
    rows = max(-(-rows // 8) * 8, 8)
    block_rows = min(rows, 1024)                        # lane-dense big tiles
    rows = -(-rows // block_rows) * block_rows
    padded = jnp.pad(values.astype(jnp.float32), (0, rows * lanes - nnz))
    padded = padded.reshape(rows, lanes)
    seed_arr = jnp.asarray([seed], jnp.int32)

    grid_spec = pltpu.PrefetchScalarGridSpec(
        num_scalar_prefetch=1,
        grid=(rows // block_rows,),
        in_specs=[pl.BlockSpec((block_rows, lanes), lambda i, s: (i, 0))],
        out_specs=pl.BlockSpec((block_rows, lanes), lambda i, s: (i, 0)),
    )
    out_vals = pl.pallas_call(
        functools.partial(_sparse_dropout_kernel, kprob=float(kprob)),
        out_shape=jax.ShapeDtypeStruct((rows, lanes), jnp.float32),
        grid_spec=grid_spec,
        compiler_params=pltpu.CompilerParams(dimension_semantics=("parallel",)),
    )(seed_arr, padded)
    return out_vals.reshape(-1)[:nnz]


def sparse_dropout(indices, values, *, kprob, seed, training=True):
    """SparseDropout.forward on a COO tensor (indices (2, nnz), values (nnz,)).

    Dropped entries come back with value 0; the PyTorch module's compacted
    (indices[:, mask], values[mask] / kprob) form is recovered host-side from
    the mask (data-dependent output size has no static-shape Pallas form).
    """
    if not training:
        return indices, values, jnp.ones(values.shape, bool)
    new_values = sparse_dropout_values(values, seed, kprob=kprob)
    keep = new_values != 0.0          # COO values are nonzero -> exact mask
    return indices, new_values, keep


# -----------------------------------------------------------------------------
# Kernel 2: fused NGCF BiGNN layer with SparseDropout fused into the L tiles:
#   L' = dropout(L);  x = L' @ E
#   y  = (E + x) @ W1^T + b1 + (x * E) @ W2^T + b2
# -----------------------------------------------------------------------------
def _bignn_kernel(counts_ref, tbl_ref, seed_ref, lap_ref, ek_ref, ei_ref,
                  w1t_ref, w2t_ref, b_ref, o_ref, xacc_ref, *,
                  n_total, kprob, apply_dropout):
    i = pl.program_id(0)
    k = pl.program_id(1)
    kmax = pl.num_programs(1)

    @pl.when(k == 0)
    def _():
        xacc_ref[...] = jnp.zeros_like(xacc_ref)

    # Accumulate x = dropout(L) @ E only over the nonzero column blocks of this
    # row block (bf16 operands, f32 MXU accumulation).  Skipped steps repeat
    # the previous block index, so no new DMA / MXU work is issued for them.
    @pl.when(k < counts_ref[i])
    def _():
        lap_tile = lap_ref[...]
        if apply_dropout:
            tm, tk = lap_tile.shape
            col_blk = tbl_ref[i * kmax + k]
            gr = jax.lax.broadcasted_iota(jnp.int32, (tm, tk), 0) + i * tm
            gc = jax.lax.broadcasted_iota(jnp.int32, (tm, tk), 1) + col_blk * tk
            gidx = gr.astype(jnp.uint32) * jnp.uint32(n_total) + gc.astype(jnp.uint32)
            keep = _keep_mask(gidx, seed_ref[0].astype(jnp.uint32), kprob)
            lap_tile = jnp.where(keep, lap_tile, jnp.zeros_like(lap_tile))
        xacc_ref[...] += jnp.dot(lap_tile, ek_ref[...],
                                 preferred_element_type=jnp.float32)

    @pl.when(k == kmax - 1)
    def _():
        # 1/kprob scaling folded into the f32 accumulator (mask*L/kprob @ E ==
        # (mask*L @ E) / kprob), so the stream stays a pure masked bf16 tile.
        inv = jnp.float32(1.0 / kprob if apply_dropout else 1.0)
        x = xacc_ref[...] * inv
        e = ei_ref[...].astype(jnp.float32)
        h1 = (e + x).astype(jnp.bfloat16)
        h2 = (x * e).astype(jnp.bfloat16)
        o_ref[...] = (
            jnp.dot(h1, w1t_ref[...], preferred_element_type=jnp.float32)
            + jnp.dot(h2, w2t_ref[...], preferred_element_type=jnp.float32)
            + b_ref[...]
        ).astype(o_ref.dtype)


def build_block_sparsity_metadata(lap, tm, tk):
    """Host-side, once per graph, from the PRE-dropout Laplacian pattern
    (dropout never adds nonzero blocks, so the pattern is a valid superset)."""
    lap_np = np.asarray(lap)
    n = lap_np.shape[0]
    num_i, num_k = n // tm, n // tk
    nz = np.abs(lap_np).reshape(num_i, tm, num_k, tk).sum(axis=(1, 3)) > 0.0
    counts = nz.sum(axis=1).astype(np.int32)
    kmax = max(int(counts.max()), 1)
    tbl = np.zeros((num_i, kmax), np.int32)
    for r in range(num_i):
        cols = np.nonzero(nz[r])[0].astype(np.int32)
        if cols.size == 0:
            cols = np.zeros((1,), np.int32)
        cols = cols[:kmax]
        tbl[r, : cols.size] = cols
        tbl[r, cols.size:] = cols[-1]
    # Flattened 1D table: 1D SMEM padding is far smaller than 2D padding.
    return jnp.asarray(counts), jnp.asarray(tbl.reshape(-1)), kmax


def bignn_forward(lap, features, w1, b1, w2, b2, *, seed=0, kprob=1.0,
                  apply_dropout=False, tm=512, tk=1024, block_meta=None):
    """lap: (N, N) f32 Laplacian (pre-dropout), features: (N, D) f32,
    w1 / w2: (O, D) torch-Linear layout, b1 / b2: (O,). Returns (N, O) f32."""
    N, D = features.shape
    O = w1.shape[0]
    assert lap.shape == (N, N)
    tm, tk = min(tm, N), min(tk, N)
    assert N % tm == 0 and N % tk == 0
    num_i = N // tm

    if block_meta is None:
        block_meta = build_block_sparsity_metadata(lap, tm, tk)
    counts, tbl, kmax = block_meta

    lap_bf = lap.astype(jnp.bfloat16)
    feat_bf = features.astype(jnp.bfloat16)
    O_pad = -(-O // 128) * 128
    w1t = jnp.zeros((D, O_pad), jnp.float32).at[:, :O].set(
        jnp.asarray(w1, jnp.float32).T).astype(jnp.bfloat16)
    w2t = jnp.zeros((D, O_pad), jnp.float32).at[:, :O].set(
        jnp.asarray(w2, jnp.float32).T).astype(jnp.bfloat16)
    bias = jnp.zeros((1, O_pad), jnp.float32).at[:, :O].set(
        (jnp.asarray(b1, jnp.float32) + jnp.asarray(b2, jnp.float32))[None, :])
    seed_arr = jnp.asarray([seed], jnp.int32)

    grid_spec = pltpu.PrefetchScalarGridSpec(
        num_scalar_prefetch=3,
        grid=(num_i, kmax),
        in_specs=[
            # L tile (column block looked up in the flattened sparsity table)
            pl.BlockSpec((tm, tk), lambda i, k, cnt, tbl, s: (i, tbl[i * kmax + k])),
            # E rows matching the L column block (matmul RHS)
            pl.BlockSpec((tk, D), lambda i, k, cnt, tbl, s: (tbl[i * kmax + k], 0)),
            # E rows of this row block (for the epilogue)
            pl.BlockSpec((tm, D), lambda i, k, cnt, tbl, s: (i, 0)),
            pl.BlockSpec((D, O_pad), lambda i, k, cnt, tbl, s: (0, 0)),   # W1^T
            pl.BlockSpec((D, O_pad), lambda i, k, cnt, tbl, s: (0, 0)),   # W2^T
            pl.BlockSpec((1, O_pad), lambda i, k, cnt, tbl, s: (0, 0)),   # b1+b2
        ],
        out_specs=pl.BlockSpec((tm, O_pad), lambda i, k, cnt, tbl, s: (i, 0)),
        scratch_shapes=[pltpu.VMEM((tm, D), jnp.float32)],
    )

    out = pl.pallas_call(
        functools.partial(_bignn_kernel, n_total=N, kprob=float(kprob),
                          apply_dropout=apply_dropout),
        out_shape=jax.ShapeDtypeStruct((N, O_pad), jnp.float32),
        grid_spec=grid_spec,
        compiler_params=pltpu.CompilerParams(
            dimension_semantics=("parallel", "arbitrary"),
            vmem_limit_bytes=32 * 1024 * 1024,
        ),
    )(counts, tbl, seed_arr, lap_bf, feat_bf, feat_bf, w1t, w2t, bias)
    return out[:, :O]


# -----------------------------------------------------------------------------
# References (same hash-based mask as the kernel).
# -----------------------------------------------------------------------------
def _dense_dropout_mask(n, seed, kprob):
    idx = jnp.arange(n * n, dtype=jnp.uint32).reshape(n, n)
    return _keep_mask(idx, jnp.uint32(seed), kprob)


def bignn_reference_matched(lap, features, w1, b1, w2, b2, *, seed, kprob,
                            apply_dropout):
    """Same math as the kernel (bf16 operands, f32 accumulation)."""
    n = lap.shape[0]
    lap_bf = lap.astype(jnp.bfloat16)
    if apply_dropout:
        keep = _dense_dropout_mask(n, seed, kprob)
        lap_bf = jnp.where(keep, lap_bf, jnp.zeros_like(lap_bf))
    e_bf = features.astype(jnp.bfloat16)
    x = jnp.dot(lap_bf, e_bf, preferred_element_type=jnp.float32)
    if apply_dropout:
        x = x * jnp.float32(1.0 / kprob)
    e = e_bf.astype(jnp.float32)
    h1 = (e + x).astype(jnp.bfloat16)
    h2 = (x * e).astype(jnp.bfloat16)
    w1t = jnp.asarray(w1, jnp.float32).T.astype(jnp.bfloat16)
    w2t = jnp.asarray(w2, jnp.float32).T.astype(jnp.bfloat16)
    return (jnp.dot(h1, w1t, preferred_element_type=jnp.float32)
            + jnp.dot(h2, w2t, preferred_element_type=jnp.float32)
            + (jnp.asarray(b1, jnp.float32) + jnp.asarray(b2, jnp.float32)))


def bignn_reference_f32(lap, features, w1, b1, w2, b2, *, seed, kprob,
                        apply_dropout):
    if apply_dropout:
        keep = _dense_dropout_mask(lap.shape[0], seed, kprob)
        lap = jnp.where(keep, lap, 0.0) * (1.0 / kprob)
    x = lap @ features
    return (features + x) @ w1.T + b1 + (x * features) @ w2.T + b2


if __name__ == "__main__":
    key = jax.random.PRNGKey(0)
    N, in_dim, out_dim = 512, 64, 32
    p_drop = 0.5
    kprob = 1.0 - p_drop

    k_adj, k_feat, k_w1, k_b1, k_w2, k_b2 = jax.random.split(key, 6)

    # Sparse, row-normalized Laplacian with one structurally empty tile block.
    adj = jax.random.uniform(k_adj, (N, N), jnp.float32)
    adj = jnp.where(adj > 0.97, adj, 0.0)
    adj = adj.at[: N // 2, N // 2:].set(0.0)
    lap = adj / jnp.maximum(adj.sum(axis=1, keepdims=True), 1e-6)

    # COO view of the sparse Laplacian (what SparseDropout receives).
    lap_np = np.asarray(lap)
    rows_np, cols_np = np.nonzero(lap_np)
    indices = jnp.asarray(np.stack([rows_np, cols_np]), jnp.int32)   # (2, nnz)
    values = jnp.asarray(lap_np[rows_np, cols_np], jnp.float32)      # (nnz,)

    # ------------------------- SparseDropout kernel -------------------------
    _, dropped_vals, keep_mask = sparse_dropout(indices, values, kprob=kprob, seed=3)
    dropped_vals = jax.block_until_ready(dropped_vals)

    # Determinism with the same seed.
    _, dropped_vals2, keep_mask2 = sparse_dropout(indices, values, kprob=kprob, seed=3)
    assert bool(jnp.all(dropped_vals == dropped_vals2))
    assert bool(jnp.all(keep_mask == keep_mask2))

    # Kept entries are exactly values / kprob, dropped entries are exactly 0.
    scaled = values * jnp.float32(1.0 / kprob)
    assert bool(jnp.all(jnp.where(keep_mask,
                                  jnp.abs(dropped_vals - scaled) < 1e-6,
                                  dropped_vals == 0.0)))
    keep_rate = float(jnp.mean(keep_mask.astype(jnp.float32)))
    assert abs(keep_rate - kprob) < 0.06, keep_rate

    # Compacted sparse output (rc, val) exactly as the PyTorch module returns.
    # TODO(synk): dynamic-size compaction (data-dependent nnz) has no
    # static-shape Pallas equivalent; it is done host-side from the keep mask.
    mask_np = np.asarray(keep_mask)
    rc = np.asarray(indices)[:, mask_np]
    val = np.asarray(values)[mask_np] * (1.0 / kprob)
    dense_from_kernel = jnp.zeros((N, N), jnp.float32).at[
        indices[0], indices[1]].add(dropped_vals)
    dense_from_compact = jnp.zeros((N, N), jnp.float32).at[
        jnp.asarray(rc[0]), jnp.asarray(rc[1])].add(jnp.asarray(val))
    assert bool(jnp.allclose(dense_from_kernel, dense_from_compact, atol=1e-6))

    # -------- fused BiGNN layer (dropout applied inside the L-tile path) ----
    features = jax.random.normal(k_feat, (N, in_dim), jnp.float32)
    bound = 1.0 / float(np.sqrt(in_dim))
    w1 = jax.random.uniform(k_w1, (out_dim, in_dim), jnp.float32, -bound, bound)
    b1 = jax.random.uniform(k_b1, (out_dim,), jnp.float32, -bound, bound)
    w2 = jax.random.uniform(k_w2, (out_dim, in_dim), jnp.float32, -bound, bound)
    b2 = jax.random.uniform(k_b2, (out_dim,), jnp.float32, -bound, bound)

    # Block-sparsity metadata computed ONCE (per graph), from the pre-dropout
    # pattern. Small tiles here only to exercise the multi-block grid.
    meta = build_block_sparsity_metadata(lap, tm=128, tk=128)

    out = bignn_forward(lap, features, w1, b1, w2, b2, seed=7, kprob=kprob,
                        apply_dropout=True, tm=128, tk=128, block_meta=meta)
    out = jax.block_until_ready(out)
    assert out.shape == (N, out_dim)

    ref = bignn_reference_matched(lap, features, w1, b1, w2, b2, seed=7,
                                  kprob=kprob, apply_dropout=True)
    assert bool(jnp.allclose(out, ref, atol=2e-3, rtol=2e-3)), \
        float(jnp.max(jnp.abs(out - ref)))

    # Loose check against the pure-f32 module math (documents the bf16
    # streaming precision choice).
    ref_f32 = bignn_reference_f32(lap, features, w1, b1, w2, b2, seed=7,
                                  kprob=kprob, apply_dropout=True)
    assert bool(jnp.allclose(out, ref_f32, atol=8e-2, rtol=8e-2))

    # No-dropout (eval mode) path.
    out_nd = bignn_forward(lap, features, w1, b1, w2, b2, apply_dropout=False,
                           tm=128, tk=128, block_meta=meta)
    out_nd = jax.block_until_ready(out_nd)
    ref_nd = bignn_reference_matched(lap, features, w1, b1, w2, b2, seed=0,
                                     kprob=1.0, apply_dropout=False)
    assert bool(jnp.allclose(out_nd, ref_nd, atol=2e-3, rtol=2e-3))

    print("KERNEL_OK")
</pallas_src>

<mosaic_0001>
module attributes {stable_mosaic.version = 11 : i64} {
  func.func @_sparse_dropout_kernel(%arg0: i32, %arg1: memref<1xi32, #tpu.memory_space<smem>>, %arg2: memref<48x128xf32, #tpu.memory_space<vmem>>, %arg3: memref<48x128xf32, #tpu.memory_space<vmem>>) attributes {dimension_semantics = [#tpu.dimension_semantics<parallel>], iteration_bounds = array<i64: 1>, scalar_prefetch = 1 : i64, scratch_operands = 0 : i64, tpu.core_type = #tpu.core_type<tc>, window_params = [{transform_indices = @transform_0, window_bounds = array<i64: 48, 128>}, {transform_indices = @transform_1, window_bounds = array<i64: 48, 128>}]} {
    %0 = tpu.iota {dimensions = array<i32: 0>} : vector<48x128xi32>
    %c48_i32 = arith.constant 48 : i32
    %1 = arith.muli %arg0, %c48_i32 : i32
    %2 = vector.broadcast %1 : i32 to vector<48x128xi32>
    %3 = arith.addi %0, %2 : vector<48x128xi32>
    %4 = tpu.iota {dimensions = array<i32: 1>} : vector<48x128xi32>
    %c128_i32 = arith.constant 128 : i32
    %5 = vector.broadcast %c128_i32 : i32 to vector<48x128xi32>
    %6 = arith.muli %3, %5 : vector<48x128xi32>
    %7 = arith.addi %6, %4 : vector<48x128xi32>
    %c0 = arith.constant 0 : index
    %8 = memref.load %arg1[%c0] : memref<1xi32, #tpu.memory_space<smem>>
    %c-1640531535_i32 = arith.constant -1640531535 : i32
    %9 = vector.broadcast %c-1640531535_i32 : i32 to vector<48x128xi32>
    %10 = arith.muli %7, %9 : vector<48x128xi32>
    %c-2048144777_i32 = arith.constant -2048144777 : i32
    %11 = arith.muli %8, %c-2048144777_i32 : i32
    %12 = vector.broadcast %11 : i32 to vector<48x128xi32>
    %13 = arith.addi %10, %12 : vector<48x128xi32>
    %c16_i32 = arith.constant 16 : i32
    %14 = vector.broadcast %c16_i32 : i32 to vector<48x128xi32>
    %15 = arith.shrui %13, %14 : vector<48x128xi32>
    %16 = arith.xori %13, %15 : vector<48x128xi32>
    %c2146121005_i32 = arith.constant 2146121005 : i32
    %17 = vector.broadcast %c2146121005_i32 : i32 to vector<48x128xi32>
    %18 = arith.muli %16, %17 : vector<48x128xi32>
    %c15_i32 = arith.constant 15 : i32
    %19 = vector.broadcast %c15_i32 : i32 to vector<48x128xi32>
    %20 = arith.shrui %18, %19 : vector<48x128xi32>
    %21 = arith.xori %18, %20 : vector<48x128xi32>
    %c-2073254261_i32 = arith.constant -2073254261 : i32
    %22 = vector.broadcast %c-2073254261_i32 : i32 to vector<48x128xi32>
    %23 = arith.muli %21, %22 : vector<48x128xi32>
    %c16_i32_0 = arith.constant 16 : i32
    %24 = vector.broadcast %c16_i32_0 : i32 to vector<48x128xi32>
    %25 = arith.shrui %23, %24 : vector<48x128xi32>
    %26 = arith.xori %23, %25 : vector<48x128xi32>
    %c8_i32 = arith.constant 8 : i32
    %27 = vector.broadcast %c8_i32 : i32 to vector<48x128xi32>
    %28 = arith.shrui %26, %27 : vector<48x128xi32>
    %c8388608_i32 = arith.constant 8388608 : i32
    %29 = vector.broadcast %c8388608_i32 : i32 to vector<48x128xi32>
    %30 = arith.cmpi uge, %28, %29 : vector<48x128xi32>
    %c0_1 = arith.constant 0 : index
    %c0_2 = arith.constant 0 : index
    %31 = vector.load %arg2[%c0_1, %c0_2] : memref<48x128xf32, #tpu.memory_space<vmem>>, vector<48x128xf32>
    %cst = arith.constant 2.000000e+00 : f32
    %32 = vector.broadcast %cst : f32 to vector<48x128xf32>
    %33 = arith.mulf %31, %32 : vector<48x128xf32>
    %cst_3 = arith.constant 0.000000e+00 : f32
    %34 = vector.broadcast %cst_3 : f32 to vector<48x128xf32>
    %35 = arith.select %30, %33, %34 : vector<48x128xi1>, vector<48x128xf32>
    %c0_4 = arith.constant 0 : index
    %c0_5 = arith.constant 0 : index
    %36 = vector.load %arg3[%c0_4, %c0_5] : memref<48x128xf32, #tpu.memory_space<vmem>>, vector<48x128xf32>
    tpu.vector_store %arg3[%c0_4, %c0_5], %35 {strides = array<i32>} : memref<48x128xf32, #tpu.memory_space<vmem>>, vector<48x128xf32>,
    return
  }
  func.func @transform_0(%arg0: i32, %arg1: memref<1xi32, #tpu.memory_space<smem>>) -> (i32, i32) {
    %c0_i32 = arith.constant 0 : i32
    %c0_i32_0 = arith.constant 0 : i32
    return %arg0, %c0_i32 : i32, i32
  }
  func.func @transform_1(%arg0: i32, %arg1: memref<1xi32, #tpu.memory_space<smem>>) -> (i32, i32) {
    %c0_i32 = arith.constant 0 : i32
    %c0_i32_0 = arith.constant 0 : i32
    return %arg0, %c0_i32 : i32, i32
  }
}

</mosaic_0001>

<bundles_post_ra>
// kernel: tpu_custom_call.1
= control target key start
LH: loop header
LB: loop body
LE: loop exit
PB: predicated region body
PF: predicated region fallthrough
CT: control target
= control target key end

     0   :  { %8 = vsyncpa [#allocation5], 0  ;;  %s274_s0 = inlined_call_operand.<no memory space> [shape: s32[1], index: 0, kind: input, shape index: {}]   ;;  %s275_s1 = inlined_call_operand.hbm [shape: f32[48,128], index: 1, kind: input, shape index: {}]   ;;  %s276_s2 = inlined_call_operand.hbm [shape: f32[48,128], index: 2, kind: output, shape index: {}]  }
   0x1   :  { %9 = vsyncpa [#allocation6], 0  ;;  %s222_s9 = smov [#allocation4]   ;;  %s174_s13 = scalar_lea.hbm %s275_s1, 768 }
   0x2   :  { %s15_s10 = sshll.u32 %s222_s9, 4  ;;  %p175_p0 = scmp.ne.s32.totalorder %s275_s1, %s174_s13  ;;  %s16_s10 = int_to_ptr.vmem [resolvable:$true] %s15_s10 }
   0x3   :  { %p178_p1 = scmp.lt.u32.totalorder %s174_s13, %s275_s1 }
   0x5   :  { %p180_p2 = pnand %p178_p1, %p175_p0 }
   0x7   :  { %183 = shalt.err (!%p180_p2)
}
   0x8   :  { %s184_s18 = scalar_lea.vmem %s16_s10, 768  ;;  %p189_p4 = scmp.lt.s32.totalorder %s16_s10, %s16_s10 }
   0x9   :  { %p185_p3 = scmp.ne.s32.totalorder %s16_s10, %s184_s18  ;;  %p190_p5 = scmp.lt.s32.totalorder %s184_s18, %s184_s18 }
   0xb   :  { %p191_p6 = por %p190_p5, %p189_p4 }
   0xd   :  { %p192_p7 = pnand %p191_p6, %p185_p3 }
   0xf   :  { %195 = shalt.err (!%p192_p7)
}
  0x10   :  { %s223_s19 = smov 128   ;;  %s224_s20 = smov 8  }
  0x11   :  { %21 = dma.hbm_to_vmem [thread:$0]  %s275_s1, 768, %s16_s10, [#allocation5], %s223_s19, %s223_s19, %s224_s20  }
  0x12   :  { %218 = dma.done.wait [#allocation5], 768  }
  0x13   :  { %219 = vsyncadd [#allocation5], 4294966528  ;;  %v25_v0 = vlaneseq  ;;  %s61_s25 = smul.u32 2246822519, %s274_s0  ;;  %v129_v58 = vld [vmem:[#allocation4] sm:$0xff]  ;;  %v130_v63 = vld [vmem:[#allocation4 + $0x8] sm:$0xff] }
  0x14   :  { %s225_s0 = smov [#allocation7]  }
  0x15   :  { %v26_v1 = vshrl.u32 %v25_v0, 7  ;;  %v41_v2 = vand.u32 127, %v25_v0  ;;  %v62_v11 = vstv %s61_s25  ;;  %s158_s1 = sshll.u32 %s225_s0, 4  ;;  %s159_s1 = int_to_ptr.vmem [resolvable:$true] %s158_s1 }
  0x16   :  { %s196_s26 = scalar_lea.vmem %s159_s1, 768  ;;  %p201_p9 = scmp.lt.s32.totalorder %s159_s1, %s159_s1 }
  0x17   :  { %v42_v3 = vmul.u32 128, %v26_v1  ;;  %v27_v4 = vadd.s32 8, %v26_v1  ;;  %v28_v5 = vadd.s32 16, %v26_v1  ;;  %v29_v6 = vadd.s32 24, %v26_v1  ;;  %p197_p8 = scmp.ne.s32.totalorder %s159_s1, %s196_s26  ;;  %p202_p10 = scmp.lt.s32.totalorder %s196_s26, %s196_s26 }
  0x18   :  { %v30_v7 = vadd.s32 32, %v26_v1  ;;  %v31_v16 = vadd.s32 40, %v26_v1 }
  0x19   :  { %v48_v8 = vadd.s32 %v42_v3, %v41_v2  ;;  %v43_v9 = vmul.u32 128, %v27_v4  ;;  %v44_v10 = vmul.u32 128, %v28_v5  ;;  %p203_p11 = por %p202_p10, %p201_p9 }
  0x1a   :  { %v45_v12 = vmul.u32 128, %v29_v6  ;;  %v46_v13 = vmul.u32 128, %v30_v7  ;;  %v131_v6 = vld [vmem:[#allocation4 + $0x10] sm:$0xff]  ;;  %v132_v7 = vld [vmem:[#allocation4 + $0x18] sm:$0xff] }
  0x1b   :  { %v55_v14 = vmul.u32 2654435761, %v48_v8  ;;  %v49_v15 = vadd.s32 %v43_v9, %v41_v2  ;;  %v50_v17 = vadd.s32 %v44_v10, %v41_v2  ;;  %v47_v27 = vmul.u32 128, %v31_v16  ;;  %p204_p12 = pnand %p203_p11, %p197_p8 }
  0x1c   :  { %v51_v18 = vadd.s32 %v45_v12, %v41_v2  ;;  %v52_v21 = vadd.s32 %v46_v13, %v41_v2  ;;  %v135_v10 = vmul.f32 2.0, %v129_v58 }
  0x1d   :  { %v63_v19 = vadd.s32 %v62_v11, %v55_v14  ;;  %v56_v20 = vmul.u32 2654435761, %v49_v15  ;;  %v57_v22 = vmul.u32 2654435761, %v50_v17  ;;  %v53_v33 = vadd.s32 %v47_v27, %v41_v2  ;;  %v133_v17 = vld [vmem:[#allocation4 + $0x20] sm:$0xff] }
  0x1e   :  { %v58_v23 = vmul.u32 2654435761, %v51_v18  ;;  %v59_v26 = vmul.u32 2654435761, %v52_v21 }
  0x1f   :  { %v69_v24 = vshrl.u32 %v63_v19, 16  ;;  %v64_v25 = vadd.s32 %v62_v11, %v56_v20  ;;  %v65_v28 = vadd.s32 %v62_v11, %v57_v22  ;;  %v60_v39 = vmul.u32 2654435761, %v53_v33 }
  0x20   :  { %v66_v29 = vadd.s32 %v62_v11, %v58_v23  ;;  %v67_v32 = vadd.s32 %v62_v11, %v59_v26  ;;  %v137_v20 = vmul.f32 2.0, %v131_v6  ;;  %v138_v22 = vmul.f32 2.0, %v132_v7 }
  0x21   :  { %v75_v30 = vxor.u32 %v69_v24, %v63_v19  ;;  %v70_v31 = vshrl.u32 %v64_v25, 16  ;;  %v71_v34 = vshrl.u32 %v65_v28, 16  ;;  %v68_v45 = vadd.s32 %v62_v11, %v60_v39 }
  0x22   :  { %v72_v35 = vshrl.u32 %v66_v29, 16  ;;  %v73_v38 = vshrl.u32 %v67_v32, 16  ;;  %v136_v11 = vmul.f32 2.0, %v130_v63 }
  0x23   :  { %v81_v36 = vmul.u32 2146121005, %v75_v30  ;;  %v76_v37 = vxor.u32 %v70_v31, %v64_v25  ;;  %v77_v40 = vxor.u32 %v71_v34, %v65_v28  ;;  %v74_v51 = vshrl.u32 %v68_v45, 16 }
  0x24   :  { %v78_v41 = vxor.u32 %v72_v35, %v66_v29  ;;  %v79_v44 = vxor.u32 %v73_v38, %v67_v32  ;;  %v139_v29 = vmul.f32 2.0, %v133_v17  ;;  %v134_v32 = vld [vmem:[#allocation4 + $0x28] sm:$0xff] }
  0x25   :  { %v87_v42 = vshrl.u32 %v81_v36, 15  ;;  %v82_v43 = vmul.u32 2146121005, %v76_v37  ;;  %v83_v46 = vmul.u32 2146121005, %v77_v40  ;;  %v80_v57 = vxor.u32 %v74_v51, %v68_v45 }
  0x26   :  { %v84_v47 = vmul.u32 2146121005, %v78_v41  ;;  %v85_v50 = vmul.u32 2146121005, %v79_v44  ;;  %v140_v38 = vmul.f32 2.0, %v134_v32 }
  0x27   :  { %v93_v48 = vxor.u32 %v87_v42, %v81_v36  ;;  %v88_v49 = vshrl.u32 %v82_v43, 15  ;;  %v89_v52 = vshrl.u32 %v83_v46, 15  ;;  %v86_v1 = vmul.u32 2146121005, %v80_v57 }
  0x28   :  { %v90_v53 = vshrl.u32 %v84_v47, 15  ;;  %v91_v56 = vshrl.u32 %v85_v50, 15 }
  0x29   :  { %v99_v54 = vmul.u32 2221713035, %v93_v48  ;;  %v94_v55 = vxor.u32 %v88_v49, %v82_v43  ;;  %v95_v59 = vxor.u32 %v89_v52, %v83_v46  ;;  %v92_v9 = vshrl.u32 %v86_v1, 15 }
  0x2a   :  { %v96_v60 = vxor.u32 %v90_v53, %v84_v47  ;;  %v97_v0 = vxor.u32 %v91_v56, %v85_v50 }
  0x2b   :  { %v105_v61 = vshrl.u32 %v99_v54, 16  ;;  %v100_v62 = vmul.u32 2221713035, %v94_v55  ;;  %v101_v2 = vmul.u32 2221713035, %v95_v59  ;;  %v98_v18 = vxor.u32 %v92_v9, %v86_v1 }
  0x2c   :  { %v102_v3 = vmul.u32 2221713035, %v96_v60  ;;  %v103_v8 = vmul.u32 2221713035, %v97_v0 }
  0x2d   :  { %v111_v4 = vxor.u32 %v105_v61, %v99_v54  ;;  %v106_v5 = vshrl.u32 %v100_v62, 16  ;;  %v107_v12 = vshrl.u32 %v101_v2, 16  ;;  %v104_v25 = vmul.u32 2221713035, %v98_v18 }
  0x2e   :  { %v108_v13 = vshrl.u32 %v102_v3, 16  ;;  %v109_v16 = vshrl.u32 %v103_v8, 16 }
  0x2f   :  { %v117_v14 = vshrl.u32 %v111_v4, 8  ;;  %v112_v15 = vxor.u32 %v106_v5, %v100_v62  ;;  %v113_v19 = vxor.u32 %v107_v12, %v101_v2  ;;  %v110_v31 = vshrl.u32 %v104_v25, 16 }
  0x30   :  { %v114_v21 = vxor.u32 %v108_v13, %v102_v3  ;;  %v115_v24 = vxor.u32 %v109_v16, %v103_v8 }
  0x31   :  { %vm123_vm0 = vcmp.ge.u32.totalorder %v117_v14, 8388608  ;;  %v118_v23 = vshrl.u32 %v112_v15, 8  ;;  %v119_v27 = vshrl.u32 %v113_v19, 8  ;;  %v116_v36 = vxor.u32 %v110_v31, %v104_v25 }
  0x32   :  { %v141_v26 = vsel %vm123_vm0, %v135_v10, 0.0  ;;  %v120_v28 = vshrl.u32 %v114_v21, 8  ;;  %v121_v30 = vshrl.u32 %v115_v24, 8 }
  0x33   :  { %147 = vst [vmem:[#allocation7] sm:$0xff] %v141_v26  ;;  %vm124_vm1 = vcmp.ge.u32.totalorder %v118_v23, 8388608  ;;  %vm125_vm2 = vcmp.ge.u32.totalorder %v119_v27, 8388608  ;;  %v122_v39 = vshrl.u32 %v116_v36, 8 }
  0x34   :  { %v142_v33 = vsel %vm124_vm1, %v136_v11, 0.0  ;;  %vm126_vm3 = vcmp.ge.u32.totalorder %v120_v28, 8388608  ;;  %v143_v34 = vsel %vm125_vm2, %v137_v20, 0.0  ;;  %vm127_vm4 = vcmp.ge.u32.totalorder %v121_v30, 8388608 }
  0x35   :  { %148 = vst [vmem:[#allocation7 + $0x8] sm:$0xff] %v142_v33  ;;  %v144_v35 = vsel %vm126_vm3, %v138_v22, 0.0  ;;  %149 = vst [vmem:[#allocation7 + $0x10] sm:$0xff] %v143_v34  ;;  %v145_v37 = vsel %vm127_vm4, %v139_v29, 0.0  ;;  %vm128_vm5 = vcmp.ge.u32.totalorder %v122_v39, 8388608 }
  0x36   :  { %150 = vst [vmem:[#allocation7 + $0x18] sm:$0xff] %v144_v35  ;;  %151 = vst [vmem:[#allocation7 + $0x20] sm:$0xff] %v145_v37  ;;  %v146_v40 = vsel %vm128_vm5, %v140_v38, 0.0 }
  0x37   :  { %152 = vst [vmem:[#allocation7 + $0x28] sm:$0xff] %v146_v40 }
  0x38   :  { %207 = shalt.err (!%p204_p12)
}
  0x39   :  { %s208_s29 = scalar_lea.hbm %s276_s2, 768 }
  0x3a   :  { %p209_p13 = scmp.ne.s32.totalorder %s276_s2, %s208_s29  ;;  %p212_p0 = scmp.lt.u32.totalorder %s208_s29, %s276_s2 }
  0x3c   :  { %p214_p1 = pnand %p212_p0, %p209_p13 }
  0x3e   :  { %217 = shalt.err (!%p214_p1)
}
  0x3f   :  { %164 = dma.vmem_to_hbm [thread:$0]  %s159_s1, 768, %s276_s2, [#allocation6], %s223_s19, %s223_s19, %s224_s20  }
  0x40   :  { %220 = dma.done.wait [#allocation6], 768  }
  0x41   :  { %221 = vsyncadd [#allocation6], 4294966528 }
  0x42   :  { %168 = vsyncpa [#allocation5], 1 }
  0x43   :  { %169 = vsyncpa [#allocation6], 1 }

</bundles_post_ra>
